<compile_context>
chip_gen: v7x
topology: tpu7x:2x2x1
jax: 0.10.0
libtpu: 0.0.40
codegen_flags: <defaults>
</compile_context>

<pallas_src>
import functools

import jax
import jax.numpy as jnp
from jax.experimental import pallas as pl
from jax.experimental.pallas import tpu as pltpu


def _cdiv(a, b):
    return (a + b - 1) // b


def _round_up(x, m):
    return ((x + m - 1) // m) * m


def _vmem_capacity_bytes():
    try:
        info = pltpu.get_tpu_info()
        cap = getattr(info, "vmem_capacity_bytes", None)
        if cap:
            return int(cap)
    except Exception:
        pass
    return 64 << 20  # conservative default (v7x per-core VMEM)


def _is_multi_tensorcore():
    # v7x has 2 TensorCores per chip; v5e/v6e have 1.
    try:
        return "v7" in jax.devices()[0].device_kind.lower()
    except Exception:
        return False


def _balanced_tile(dim, max_tile, gran):
    """Pick #tiles first, then an evenly-sized `gran`-aligned tile.

    Avoids the clamp-then-round blowup (M=300 stays ~304 padded work, not
    512).  A dim that fits in one tile uses the exact dim (no masking).
    """
    d = _round_up(dim, gran)
    nt = _cdiv(d, max_tile)
    if nt <= 1:
        return dim
    return _round_up(_cdiv(d, nt), gran)


def _maybe_split_for_megacore(tm, tn, M, N):
    """On multi-TC chips ensure >=2 parallel (i, j) tiles so both cores work."""
    if not _is_multi_tensorcore():
        return tm, tn
    if _cdiv(M, tm) * _cdiv(N, tn) >= 2:
        return tm, tn
    n128 = _round_up(N, 128)
    if n128 >= 256:  # prefer splitting N (stays lane-dense)
        return tm, _round_up(_cdiv(n128, 2), 128)
    m8 = _round_up(M, 8)
    if m8 >= 16:
        return _round_up(_cdiv(m8, 2), 8), tn
    return tm, tn


def _linear_kernel_acc(x_ref, w_ref, b_ref, o_ref, acc_ref):
    """General path: K split over innermost grid axis, f32 VMEM accumulator."""
    k = pl.program_id(2)

    @pl.when(k == 0)
    def _init():
        acc_ref[...] = jnp.zeros_like(acc_ref)

    # Hot path: pure MXU matmul accumulation in f32.
    acc_ref[...] += jnp.dot(
        x_ref[...], w_ref[...], preferred_element_type=jnp.float32
    )

    @pl.when(k == pl.num_programs(2) - 1)
    def _epilogue():
        o_ref[...] = (acc_ref[...] + b_ref[...].astype(jnp.float32)).astype(
            o_ref.dtype
        )


def _linear_kernel_single_k(x_ref, w_ref, b_ref, o_ref):
    """Fast path: whole K in one tile -> no accumulator, no branches."""
    o_ref[...] = (
        jnp.dot(x_ref[...], w_ref[...], preferred_element_type=jnp.float32)
        + b_ref[...].astype(jnp.float32)
    ).astype(o_ref.dtype)


@functools.partial(jax.jit, static_argnames=("tm_max", "tn_max", "tk_max"))
def linear(x, w, b, *, tm_max=None, tn_max=None, tk_max=None):
    """out = x @ w + b   (torch: x.mm(w) + b.expand_as(...))."""
    M, K = x.shape
    K2, N = w.shape
    assert K == K2 and b.shape == (N,)
    itemsize = x.dtype.itemsize

    # --- per-generation defaults -------------------------------------------
    vmem_cap = _vmem_capacity_bytes()
    big_vmem = vmem_cap >= (96 << 20)            # v5e / v6e: 128 MiB VMEM
    if tm_max is None:
        tm_max = 512 if big_vmem else 256        # v7x: smaller working set
    if tn_max is None:
        tn_max = 1024
    if tk_max is None:
        tk_max = 1024
    budget_cap = min(int(vmem_cap * 3 // 4), 100 << 20)  # ~96 MiB v5e/v6e, 48 MiB v7x

    # --- balanced, (8,128)-aligned tiles; no M/N input padding --------------
    tm = _balanced_tile(M, tm_max, 8)
    tn = _balanced_tile(N, tn_max, 128)
    tm, tn = _maybe_split_for_megacore(tm, tn, M, N)
    grid_m = _cdiv(M, tm)
    grid_n = _cdiv(N, tn)

    b2d = b.reshape(1, N)

    # TODO(synk): optional bf16 cast of x/w (f32 accumulation) would unlock the
    # bf16 MXU peak; kept f32 to match the torch module's numerics exactly.

    if K <= tk_max:
        # ---- single-K fast path: whole reduction in one MXU pass -----------
        tk = K
        vmem_need = 2 * (tm * tk + tk * tn + tn + tm * tn) * itemsize
        vmem_limit = min(max(2 * vmem_need, 32 << 20), budget_cap)
        cost = pl.CostEstimate(
            flops=2 * M * N * K,
            transcendentals=0,
            bytes_accessed=(
                M * K * grid_n + K * N * grid_m + N * grid_m * grid_n + M * N
            ) * itemsize,
        )
        return pl.pallas_call(
            _linear_kernel_single_k,
            out_shape=jax.ShapeDtypeStruct((M, N), x.dtype),
            grid_spec=pltpu.PrefetchScalarGridSpec(
                num_scalar_prefetch=0,
                grid=(grid_m, grid_n),
                in_specs=[
                    pl.BlockSpec((tm, tk), lambda i, j: (i, 0)),   # x tile
                    pl.BlockSpec((tk, tn), lambda i, j: (0, j)),   # w tile
                    pl.BlockSpec((1, tn), lambda i, j: (0, j)),    # bias row
                ],
                out_specs=pl.BlockSpec((tm, tn), lambda i, j: (i, j)),
            ),
            compiler_params=pltpu.CompilerParams(
                dimension_semantics=("parallel", "parallel"),
                vmem_limit_bytes=int(vmem_limit),
            ),
            cost_estimate=cost,
        )(x, w, b2d)

    # ---- general path: K split over innermost ("arbitrary") grid axis ------
    tk = _balanced_tile(K, tk_max, 128)          # nt > 1 here, so tk % 128 == 0
    grid_k = _cdiv(K, tk)
    Kp = grid_k * tk
    # Only K needs zero padding (padded elements contribute 0 to the dot);
    # ragged M/N edge blocks only touch output rows/cols that are masked off.
    xp = x if Kp == K else jnp.pad(x, ((0, 0), (0, Kp - K)))
    wp = w if Kp == K else jnp.pad(w, ((0, Kp - K), (0, 0)))

    vmem_need = (
        2 * (tm * tk + tk * tn + tn + tm * tn) * itemsize + tm * tn * 4
    )
    vmem_limit = min(max(2 * vmem_need, 32 << 20), budget_cap)
    cost = pl.CostEstimate(
        flops=2 * M * N * Kp,
        transcendentals=0,
        bytes_accessed=(
            M * Kp * grid_n + Kp * N * grid_m + N * grid_m * grid_n + M * N
        ) * itemsize,
    )
    return pl.pallas_call(
        _linear_kernel_acc,
        out_shape=jax.ShapeDtypeStruct((M, N), x.dtype),
        grid_spec=pltpu.PrefetchScalarGridSpec(
            num_scalar_prefetch=0,
            grid=(grid_m, grid_n, grid_k),
            in_specs=[
                pl.BlockSpec((tm, tk), lambda i, j, k: (i, k)),   # x tile
                pl.BlockSpec((tk, tn), lambda i, j, k: (k, j)),   # w tile
                pl.BlockSpec((1, tn), lambda i, j, k: (0, j)),    # bias row
            ],
            out_specs=pl.BlockSpec((tm, tn), lambda i, j, k: (i, j)),
            scratch_shapes=[pltpu.VMEM((tm, tn), jnp.float32)],
        ),
        compiler_params=pltpu.CompilerParams(
            dimension_semantics=("parallel", "parallel", "arbitrary"),
            vmem_limit_bytes=int(vmem_limit),
        ),
        cost_estimate=cost,
    )(xp, wp, b2d)


if __name__ == "__main__":
    key = jax.random.PRNGKey(0)
    k_x, k_w, k_b = jax.random.split(key, 3)

    # Shapes consistent with the module's forward: x (batch, in_features).
    batch, in_features, out_features = 16, 32, 128
    x = jax.random.normal(k_x, (batch, in_features), dtype=jnp.float32)
    w = jax.random.normal(k_w, (in_features, out_features), dtype=jnp.float32)
    b = jax.random.normal(k_b, (out_features,), dtype=jnp.float32)

    out = jax.block_until_ready(linear(x, w, b))
    ref = x @ w + b[None, :]
    assert out.shape == (batch, out_features)
    assert jnp.allclose(out, ref, atol=1e-4, rtol=1e-4)

    # Ragged shape, default tiles: exercises the no-pad edge-masking path.
    xb = jax.random.normal(k_x, (300, 200), dtype=jnp.float32)
    wb = jax.random.normal(k_w, (200, 640), dtype=jnp.float32)
    bb = jax.random.normal(k_b, (640,), dtype=jnp.float32)
    outb = jax.block_until_ready(linear(xb, wb, bb))
    refb = xb @ wb + bb[None, :]
    assert outb.shape == (300, 640)
    assert jnp.allclose(outb, refb, atol=1e-3, rtol=1e-3)

    # Same shapes with tiny tile caps: exercises the K-split accumulator
    # kernel plus masked edge blocks in M and N simultaneously.
    outc = jax.block_until_ready(
        linear(xb, wb, bb, tm_max=128, tn_max=256, tk_max=128)
    )
    assert outc.shape == (300, 640)
    assert jnp.allclose(outc, refb, atol=1e-3, rtol=1e-3)

    print("KERNEL_OK")
</pallas_src>

<mosaic_0001>
module attributes {stable_mosaic.version = 11 : i64} {
  func.func @_linear_kernel_single_k(%arg0: i32, %arg1: i32, %arg2: memref<16x32xf32, #tpu.memory_space<vmem>>, %arg3: memref<32x128xf32, #tpu.memory_space<vmem>>, %arg4: memref<1x128xf32, #tpu.memory_space<vmem>>, %arg5: memref<16x128xf32, #tpu.memory_space<vmem>>) attributes {dimension_semantics = [#tpu.dimension_semantics<parallel>, #tpu.dimension_semantics<parallel>], iteration_bounds = array<i64: 1, 1>, scalar_prefetch = 0 : i64, scratch_operands = 0 : i64, tpu.core_type = #tpu.core_type<tc>, window_params = [{transform_indices = @transform_0, window_bounds = array<i64: 16, 32>}, {transform_indices = @transform_1, window_bounds = array<i64: 32, 128>}, {transform_indices = @transform_2, window_bounds = array<i64: 1, 128>}, {transform_indices = @transform_3, window_bounds = array<i64: 16, 128>}]} {
    %c0 = arith.constant 0 : index
    %c0_0 = arith.constant 0 : index
    %0 = vector.load %arg2[%c0, %c0_0] : memref<16x32xf32, #tpu.memory_space<vmem>>, vector<16x32xf32>
    %c0_1 = arith.constant 0 : index
    %c0_2 = arith.constant 0 : index
    %1 = vector.load %arg3[%c0_1, %c0_2] : memref<32x128xf32, #tpu.memory_space<vmem>>, vector<32x128xf32>
    %cst = arith.constant dense<0.000000e+00> : vector<16x128xf32>
    %2 = tpu.matmul %0, %1, %cst {dimension_numbers = #tpu.dot_dimension_numbers<[1], [0], [0], [1], [0, 0, 1, 1], [], []>} : vector<16x32xf32>, vector<32x128xf32>, vector<16x128xf32> -> vector<16x128xf32>
    %c0_3 = arith.constant 0 : index
    %c0_4 = arith.constant 0 : index
    %3 = vector.load %arg4[%c0_3, %c0_4] : memref<1x128xf32, #tpu.memory_space<vmem>>, vector<1x128xf32>
    %4 = vector.broadcast %3 : vector<1x128xf32> to vector<16x128xf32>
    %5 = arith.addf %2, %4 : vector<16x128xf32>
    %c0_5 = arith.constant 0 : index
    %c0_6 = arith.constant 0 : index
    %6 = vector.load %arg5[%c0_5, %c0_6] : memref<16x128xf32, #tpu.memory_space<vmem>>, vector<16x128xf32>
    tpu.vector_store %arg5[%c0_5, %c0_6], %5 {strides = array<i32>} : memref<16x128xf32, #tpu.memory_space<vmem>>, vector<16x128xf32>,
    return
  }
  func.func @transform_0(%arg0: i32, %arg1: i32) -> (i32, i32) {
    %c0_i32 = arith.constant 0 : i32
    %c0_i32_0 = arith.constant 0 : i32
    return %arg0, %c0_i32 : i32, i32
  }
  func.func @transform_1(%arg0: i32, %arg1: i32) -> (i32, i32) {
    %c0_i32 = arith.constant 0 : i32
    %c0_i32_0 = arith.constant 0 : i32
    return %c0_i32, %arg1 : i32, i32
  }
  func.func @transform_2(%arg0: i32, %arg1: i32) -> (i32, i32) {
    %c0_i32 = arith.constant 0 : i32
    %c0_i32_0 = arith.constant 0 : i32
    return %c0_i32, %arg1 : i32, i32
  }
  func.func @transform_3(%arg0: i32, %arg1: i32) -> (i32, i32) {
    %c0_i32 = arith.constant 0 : i32
    return %arg0, %arg1 : i32, i32
  }
}

</mosaic_0001>

<bundles_post_ra>
// kernel: linear.1
= control target key start
LH: loop header
LB: loop body
LE: loop exit
PB: predicated region body
PF: predicated region fallthrough
CT: control target
= control target key end

     0   :  { %8 = vsyncpa [#allocation3], 0  ;;  %s336_s0 = inlined_call_operand.hbm [shape: f32[16,32], index: 0, kind: input, shape index: {}]   ;;  %s337_s1 = inlined_call_operand.hbm [shape: f32[32,128], index: 1, kind: input, shape index: {}]   ;;  %s338_s2 = inlined_call_operand.vmem [shape: f32[1,128], index: 2, kind: input, shape index: {}]   ;;  %s339_s3 = inlined_call_operand.hbm [shape: f32[16,128], index: 3, kind: output, shape index: {}]  }
   0x1   :  { %9 = vsyncpa [#allocation6], 0 }
   0x2   :  { %10 = vsyncpa [#allocation4], 0  ;;  %s263_s12 = smov [#allocation2]   ;;  %s191_s16 = scalar_lea.hbm %s336_s0, 256 }
   0x3   :  { %s16_s13 = sshll.u32 %s263_s12, 4  ;;  %p192_p0 = scmp.ne.s32.totalorder %s336_s0, %s191_s16  ;;  %s17_s13 = int_to_ptr.vmem [resolvable:$true] %s16_s13 }
   0x4   :  { %p195_p1 = scmp.lt.u32.totalorder %s191_s16, %s336_s0 }
   0x6   :  { %p197_p2 = pnand %p195_p1, %p192_p0 }
   0x8   :  { %200 = shalt.err (!%p197_p2)
}
   0x9   :  { %s201_s21 = scalar_lea.vmem %s17_s13, 256  ;;  %p206_p4 = scmp.lt.s32.totalorder %s17_s13, %s17_s13 }
   0xa   :  { %p202_p3 = scmp.ne.s32.totalorder %s17_s13, %s201_s21  ;;  %p207_p5 = scmp.lt.s32.totalorder %s201_s21, %s201_s21 }
   0xc   :  { %p208_p6 = por %p207_p5, %p206_p4 }
   0xe   :  { %p209_p7 = pnand %p208_p6, %p202_p3 }
  0x10   :  { %212 = shalt.err (!%p209_p7)
}
  0x11   :  { %s264_s22 = smov 128   ;;  %s265_s23 = smov 8  }
  0x12   :  { %22 = dma.hbm_to_vmem [thread:$0]  %s336_s0, 256, %s17_s13, [#allocation3], %s264_s22, %s264_s22, %s265_s23  }
  0x13   :  { %s266_s26 = smov [#allocation5]   ;;  %s213_s30 = scalar_lea.hbm %s337_s1, 512 }
  0x14   :  { %s28_s27 = sshll.u32 %s266_s26, 4  ;;  %p214_p8 = scmp.ne.s32.totalorder %s337_s1, %s213_s30  ;;  %s29_s27 = int_to_ptr.vmem [resolvable:$true] %s28_s27 }
  0x15   :  { %p217_p9 = scmp.lt.u32.totalorder %s213_s30, %s337_s1 }
  0x17   :  { %p219_p10 = pnand %p217_p9, %p214_p8 }
  0x19   :  { %222 = shalt.err (!%p219_p10)
}
  0x1a   :  { %s223_s8 = scalar_lea.vmem %s29_s27, 512  ;;  %p228_p12 = scmp.lt.s32.totalorder %s29_s27, %s29_s27 }
  0x1b   :  { %p224_p11 = scmp.ne.s32.totalorder %s29_s27, %s223_s8  ;;  %p229_p13 = scmp.lt.s32.totalorder %s223_s8, %s223_s8 }
  0x1d   :  { %p230_p0 = por %p229_p13, %p228_p12 }
  0x1f   :  { %p231_p1 = pnand %p230_p0, %p224_p11 }
  0x21   :  { %234 = shalt.err (!%p231_p1)
}
  0x22   :  { %34 = dma.hbm_to_vmem [thread:$0]  %s337_s1, 512, %s29_s27, [#allocation6], %s264_s22, %s264_s22, %s265_s23  }
  0x23   :  { %257 = dma.done.wait [#allocation3], 256  }
  0x24   :  { %258 = vsyncadd [#allocation3], 4294967040 }
  0x25   :  { %259 = dma.done.wait [#allocation6], 512  }
  0x26   :  { %260 = vsyncadd [#allocation6], 4294966784  ;;  %vm56_vm0 = vcmask 261120   ;;  %v45_v0 = vld [vmem:[#allocation5] sm:$0xff]  ;;  %v46_v1 = vld [vmem:[#allocation5 + $0x8] sm:$0xff]  ;;  %s267_s11 = smov [#allocation7]  }
  0x27   :  { %v47_v2 = vld [vmem:[#allocation5 + $0x10] sm:$0xff]  ;;  %v178_v3 = vpack.c.bf16 %v46_v1, %v45_v0  ;;  %v48_v4 = vld [vmem:[#allocation5 + $0x18] sm:$0xff]  ;;  %s145_s12 = sshll.u32 %s267_s11, 4  ;;  %s146_s12 = int_to_ptr.vmem [resolvable:$true] %s145_s12 }
  0x28   :  { %v43_v5 = vld [vmem:[#allocation2] sm:$0xff]  ;;  %v182_v6 = vpack.c.bf16 %v48_v4, %v47_v2  ;;  %v44_v7 = vld [vmem:[#allocation2 + $0x8] sm:$0xff]  ;;  %s235_s13 = scalar_lea.vmem %s146_s12, 256  ;;  %p240_p3 = scmp.lt.s32.totalorder %s146_s12, %s146_s12 }
  0x29   :  { %175 = vmatprep.mubr.msk.f32.mxu0 %vm56_vm0, %v43_v5  ;;  %179 = vmatprep.subr.bf16.mxu0 %v178_v3  ;;  %v158_v8 = vld [vmem:[%s338_s2] ss:$0 sm:$0xff]  ;;  %p236_p2 = scmp.ne.s32.totalorder %s146_s12, %s235_s13  ;;  %p241_p4 = scmp.lt.s32.totalorder %s235_s13, %s235_s13 }
  0x2a   :  { %181 = vmatpush3.bf16.msra.mxu0 %v178_v3 }
  0x2b   :  { %183 = vmatprep.subr.bf16.mxu0 %v182_v6  ;;  %p242_p5 = por %p241_p4, %p240_p3 }
  0x2d   :  { %p243_p6 = pnand %p242_p5, %p236_p2 }
  0x2e   :  { %185 = vmatpush3.bf16.msra.mxu0 %v182_v6 }
  0x31   :  { %176 = vmatmul.mubr.msk.f32.vlgmr.msra.gmra.mrb[0].mxu0 %vm56_vm0, %v44_v7 }
 0x104   :  { %v177_v9 = vpop.f32.mrb[0].mxu0 }
 0x105   :  { %v135_v10 = vadd.f32 %v177_v9, %v158_v8  ;;  %v129_v11 = vpop.f32.mrb[1].mxu0 }
 0x106   :  { %v130_v12 = vadd.f32 %v158_v8, %v129_v11 }
 0x107   :  { %139 = vst [vmem:[#allocation7 + $0x8] sm:$0xff] %v135_v10 }
 0x108   :  { %138 = vst [vmem:[#allocation7] sm:$0xff] %v130_v12 }
 0x109   :  { %246 = shalt.err (!%p243_p6)
}
 0x10a   :  { %s247_s2 = scalar_lea.hbm %s339_s3, 256 }
 0x10b   :  { %p248_p7 = scmp.ne.s32.totalorder %s339_s3, %s247_s2  ;;  %p251_p8 = scmp.lt.u32.totalorder %s247_s2, %s339_s3 }
 0x10d   :  { %p253_p9 = pnand %p251_p8, %p248_p7 }
 0x10f   :  { %256 = shalt.err (!%p253_p9)
}
 0x110   :  { %151 = dma.vmem_to_hbm [thread:$0]  %s146_s12, 256, %s339_s3, [#allocation4], %s264_s22, %s264_s22, %s265_s23  }
 0x111   :  { %261 = dma.done.wait [#allocation4], 256  }
 0x112   :  { %262 = vsyncadd [#allocation4], 4294967040 }
 0x113   :  { %155 = vsyncpa [#allocation3], 1 }
 0x114   :  { %156 = vsyncpa [#allocation6], 1 }
 0x115   :  { %157 = vsyncpa [#allocation4], 1 }

</bundles_post_ra>
